<compile_context>
chip_gen: v7x
topology: tpu7x:2x2x1
jax: 0.10.0
libtpu: 0.0.40
codegen_flags: <defaults>
</compile_context>

<pallas_src>
import functools
import math

import jax
import jax.numpy as jnp
from jax.experimental import pallas as pl
from jax.experimental.pallas import tpu as pltpu


# ------------------------------ Pallas kernel ------------------------------ #

def _mha_kernel(xq_ref, xkv_ref,
                wq_ref, bq_ref, wk_ref, bk_ref, wv_ref, bv_ref,
                wo_ref, bo_ref, o_ref, *, num_heads, scale):
    """Fused multi-head self-attention for one (batch, query-tile) block.

    xq_ref : (1, TQ, H)   query rows
    xkv_ref: (1, S,  H)   full sequence for K/V
    wq/wk/wv_ref: (nH, H, Dh), bq/bk/bv_ref: (nH, 1, Dh)
    wo_ref : (nH, Dh, H), bo_ref: (1, H)
    o_ref  : (1, TQ, H)
    """
    _, tq, hidden = xq_ref.shape
    xq = xq_ref[0].astype(jnp.float32)        # (TQ, H)
    xkv = xkv_ref[0].astype(jnp.float32)      # (S,  H)

    acc = jnp.zeros((tq, hidden), jnp.float32)
    for h in range(num_heads):
        # Per-head projections; softmax scale folded into q.
        q = (jnp.dot(xq, wq_ref[h], preferred_element_type=jnp.float32)
             + bq_ref[h]) * scale                                   # (TQ, Dh)
        k = jnp.dot(xkv, wk_ref[h], preferred_element_type=jnp.float32) + bk_ref[h]
        v = jnp.dot(xkv, wv_ref[h], preferred_element_type=jnp.float32) + bv_ref[h]

        # scores = q @ k^T without materializing a transpose: contract last dims.
        s = jax.lax.dot_general(q, k, (((1,), (1,)), ((), ())),
                                preferred_element_type=jnp.float32)  # (TQ, S)
        s = s - jnp.max(s, axis=-1, keepdims=True)
        p = jnp.exp(s)
        p = p * pl.reciprocal(jnp.sum(p, axis=-1, keepdims=True), approx=True)

        ctx = jnp.dot(p, v, preferred_element_type=jnp.float32)      # (TQ, Dh)
        # Fused output projection: out_proj distributes over the head-concat axis.
        acc = acc + jnp.dot(ctx, wo_ref[h], preferred_element_type=jnp.float32)

    o_ref[0] = (acc + bo_ref[...].astype(jnp.float32)).astype(o_ref.dtype)


# ------------------------------ wrapper / glue ------------------------------ #

def mha_forward(x, params, num_heads, q_tile=256):
    """x: (B, S, H) -> (B, S, H). Fused MHA in one pallas_call."""
    B, S, H = x.shape
    Dh = H // num_heads
    scale = 1.0 / math.sqrt(Dh)

    TQ = min(S, q_tile)
    assert S % TQ == 0, "S must be divisible by the query tile"

    # Per-head weight layout (done once in the jit graph, outside the kernel).
    def per_head_in(w, b):   # (H, H) -> (nH, H, Dh); (H,) -> (nH, 1, Dh)
        return (w.reshape(H, num_heads, Dh).transpose(1, 0, 2),
                b.reshape(num_heads, 1, Dh))

    wq, bq = per_head_in(params["wq"], params["bq"])
    wk, bk = per_head_in(params["wk"], params["bk"])
    wv, bv = per_head_in(params["wv"], params["bv"])
    wo = params["wo"].reshape(num_heads, Dh, H)      # (nH, Dh, H)
    bo = params["bo"].reshape(1, H)

    kern = functools.partial(_mha_kernel, num_heads=num_heads, scale=scale)
    const = lambda b, i: (0, 0, 0)

    return pl.pallas_call(
        kern,
        out_shape=jax.ShapeDtypeStruct((B, S, H), x.dtype),
        grid=(B, S // TQ),
        in_specs=[
            pl.BlockSpec((1, TQ, H), lambda b, i: (b, i, 0)),          # x (query rows)
            pl.BlockSpec((1, S, H), lambda b, i: (b, 0, 0)),           # x (K/V rows)
            pl.BlockSpec((num_heads, H, Dh), const),                   # wq
            pl.BlockSpec((num_heads, 1, Dh), const),                   # bq
            pl.BlockSpec((num_heads, H, Dh), const),                   # wk
            pl.BlockSpec((num_heads, 1, Dh), const),                   # bk
            pl.BlockSpec((num_heads, H, Dh), const),                   # wv
            pl.BlockSpec((num_heads, 1, Dh), const),                   # bv
            pl.BlockSpec((num_heads, Dh, H), const),                   # wo
            pl.BlockSpec((1, H), lambda b, i: (0, 0)),                 # bo
        ],
        out_specs=pl.BlockSpec((1, TQ, H), lambda b, i: (b, i, 0)),
        compiler_params=pltpu.CompilerParams(
            dimension_semantics=("parallel", "parallel"),
            vmem_limit_bytes=32 * 1024 * 1024),
    )(x, x, wq, bq, wk, bk, wv, bv, wo, bo)


# ------------------------- reference (pure JAX) ----------------------------- #

def mha_reference(x, params, num_heads):
    B, S, H = x.shape
    Dh = H // num_heads
    q = x @ params["wq"] + params["bq"]
    k = x @ params["wk"] + params["bk"]
    v = x @ params["wv"] + params["bv"]

    def split(t):
        return t.reshape(B, S, num_heads, Dh).transpose(0, 2, 1, 3)

    q, k, v = split(q), split(k), split(v)
    s = jnp.einsum("bhqd,bhkd->bhqk", q, k) / math.sqrt(Dh)
    w = jax.nn.softmax(s, axis=-1)
    ctx = jnp.einsum("bhqk,bhkd->bhqd", w, v)
    ctx = ctx.transpose(0, 2, 1, 3).reshape(B, S, H)
    return ctx @ params["wo"] + params["bo"]


# ----------------------------------- main ----------------------------------- #

def init_params(key, hidden_dim):
    keys = jax.random.split(key, 8)
    bound = 1.0 / math.sqrt(hidden_dim)

    def lin(kw, kb):
        w = jax.random.uniform(kw, (hidden_dim, hidden_dim), jnp.float32, -bound, bound)
        b = jax.random.uniform(kb, (hidden_dim,), jnp.float32, -bound, bound)
        return w, b

    p = {}
    p["wq"], p["bq"] = lin(keys[0], keys[1])
    p["wk"], p["bk"] = lin(keys[2], keys[3])
    p["wv"], p["bv"] = lin(keys[4], keys[5])
    p["wo"], p["bo"] = lin(keys[6], keys[7])
    return p


if __name__ == "__main__":
    BATCH, SEQ, HIDDEN, NUM_HEADS = 2, 8, 32, 4

    key = jax.random.PRNGKey(0)
    k_param, k_x = jax.random.split(key)
    params = init_params(k_param, HIDDEN)
    x = jax.random.normal(k_x, (BATCH, SEQ, HIDDEN), jnp.float32)

    fwd = jax.jit(functools.partial(mha_forward, num_heads=NUM_HEADS))
    out = fwd(x, params)
    jax.block_until_ready(out)

    assert out.shape == (BATCH, SEQ, HIDDEN), out.shape
    assert bool(jnp.all(jnp.isfinite(out)))

    ref = mha_reference(x, params, NUM_HEADS)
    max_err = float(jnp.max(jnp.abs(out - ref)))
    assert max_err < 5e-3, f"max abs error vs reference: {max_err}"

    print("KERNEL_OK")
</pallas_src>

<mosaic_0001>
module attributes {stable_mosaic.version = 11 : i64} {
  func.func @_mha_kernel(%arg0: i32, %arg1: i32, %arg2: memref<1x8x32xf32, #tpu.memory_space<vmem>>, %arg3: memref<1x8x32xf32, #tpu.memory_space<vmem>>, %arg4: memref<4x32x8xf32, #tpu.memory_space<vmem>>, %arg5: memref<4x1x8xf32, #tpu.memory_space<vmem>>, %arg6: memref<4x32x8xf32, #tpu.memory_space<vmem>>, %arg7: memref<4x1x8xf32, #tpu.memory_space<vmem>>, %arg8: memref<4x32x8xf32, #tpu.memory_space<vmem>>, %arg9: memref<4x1x8xf32, #tpu.memory_space<vmem>>, %arg10: memref<4x8x32xf32, #tpu.memory_space<vmem>>, %arg11: memref<1x32xf32, #tpu.memory_space<vmem>>, %arg12: memref<1x8x32xf32, #tpu.memory_space<vmem>>) attributes {dimension_semantics = [#tpu.dimension_semantics<parallel>, #tpu.dimension_semantics<parallel>], iteration_bounds = array<i64: 2, 1>, scalar_prefetch = 0 : i64, scratch_operands = 0 : i64, tpu.core_type = #tpu.core_type<tc>, window_params = [{transform_indices = @transform_0, window_bounds = array<i64: 1, 8, 32>}, {transform_indices = @transform_1, window_bounds = array<i64: 1, 8, 32>}, {pipeline_mode = #tpu.pipeline_mode<synchronous>, transform_indices = @transform_2, window_bounds = array<i64: 4, 32, 8>}, {pipeline_mode = #tpu.pipeline_mode<synchronous>, transform_indices = @transform_3, window_bounds = array<i64: 4, 1, 8>}, {pipeline_mode = #tpu.pipeline_mode<synchronous>, transform_indices = @transform_4, window_bounds = array<i64: 4, 32, 8>}, {pipeline_mode = #tpu.pipeline_mode<synchronous>, transform_indices = @transform_5, window_bounds = array<i64: 4, 1, 8>}, {pipeline_mode = #tpu.pipeline_mode<synchronous>, transform_indices = @transform_6, window_bounds = array<i64: 4, 32, 8>}, {pipeline_mode = #tpu.pipeline_mode<synchronous>, transform_indices = @transform_7, window_bounds = array<i64: 4, 1, 8>}, {pipeline_mode = #tpu.pipeline_mode<synchronous>, transform_indices = @transform_8, window_bounds = array<i64: 4, 8, 32>}, {pipeline_mode = #tpu.pipeline_mode<synchronous>, transform_indices = @transform_9, window_bounds = array<i64: 1, 32>}, {transform_indices = @transform_10, window_bounds = array<i64: 1, 8, 32>}]} {
    %c0 = arith.constant 0 : index
    %c0_0 = arith.constant 0 : index
    %c0_1 = arith.constant 0 : index
    %0 = vector.load %arg2[%c0, %c0_0, %c0_1] : memref<1x8x32xf32, #tpu.memory_space<vmem>>, vector<1x8x32xf32>
    %1 = vector.shape_cast %0 : vector<1x8x32xf32> to vector<8x32xf32>
    %c0_2 = arith.constant 0 : index
    %c0_3 = arith.constant 0 : index
    %c0_4 = arith.constant 0 : index
    %2 = vector.load %arg3[%c0_2, %c0_3, %c0_4] : memref<1x8x32xf32, #tpu.memory_space<vmem>>, vector<1x8x32xf32>
    %3 = vector.shape_cast %2 : vector<1x8x32xf32> to vector<8x32xf32>
    %cst = arith.constant 0.000000e+00 : f32
    %4 = vector.broadcast %cst : f32 to vector<8x32xf32>
    %c0_5 = arith.constant 0 : index
    %c0_6 = arith.constant 0 : index
    %c0_7 = arith.constant 0 : index
    %5 = vector.load %arg4[%c0_5, %c0_6, %c0_7] : memref<4x32x8xf32, #tpu.memory_space<vmem>>, vector<1x32x8xf32>
    %6 = vector.shape_cast %5 : vector<1x32x8xf32> to vector<32x8xf32>
    %cst_8 = arith.constant dense<0.000000e+00> : vector<8x8xf32>
    %7 = tpu.matmul %1, %6, %cst_8 {dimension_numbers = #tpu.dot_dimension_numbers<[1], [0], [0], [1], [0, 0, 1, 1], [], []>} : vector<8x32xf32>, vector<32x8xf32>, vector<8x8xf32> -> vector<8x8xf32>
    %c0_9 = arith.constant 0 : index
    %c0_10 = arith.constant 0 : index
    %c0_11 = arith.constant 0 : index
    %8 = vector.load %arg5[%c0_9, %c0_10, %c0_11] : memref<4x1x8xf32, #tpu.memory_space<vmem>>, vector<1x1x8xf32>
    %9 = vector.shape_cast %8 : vector<1x1x8xf32> to vector<1x8xf32>
    %10 = vector.broadcast %9 : vector<1x8xf32> to vector<8x8xf32>
    %11 = arith.addf %7, %10 : vector<8x8xf32>
    %cst_12 = arith.constant 0.353553385 : f32
    %12 = vector.broadcast %cst_12 : f32 to vector<8x8xf32>
    %13 = arith.mulf %11, %12 : vector<8x8xf32>
    %c0_13 = arith.constant 0 : index
    %c0_14 = arith.constant 0 : index
    %c0_15 = arith.constant 0 : index
    %14 = vector.load %arg6[%c0_13, %c0_14, %c0_15] : memref<4x32x8xf32, #tpu.memory_space<vmem>>, vector<1x32x8xf32>
    %15 = vector.shape_cast %14 : vector<1x32x8xf32> to vector<32x8xf32>
    %cst_16 = arith.constant dense<0.000000e+00> : vector<8x8xf32>
    %16 = tpu.matmul %3, %15, %cst_16 {dimension_numbers = #tpu.dot_dimension_numbers<[1], [0], [0], [1], [0, 0, 1, 1], [], []>} : vector<8x32xf32>, vector<32x8xf32>, vector<8x8xf32> -> vector<8x8xf32>
    %c0_17 = arith.constant 0 : index
    %c0_18 = arith.constant 0 : index
    %c0_19 = arith.constant 0 : index
    %17 = vector.load %arg7[%c0_17, %c0_18, %c0_19] : memref<4x1x8xf32, #tpu.memory_space<vmem>>, vector<1x1x8xf32>
    %18 = vector.shape_cast %17 : vector<1x1x8xf32> to vector<1x8xf32>
    %19 = vector.broadcast %18 : vector<1x8xf32> to vector<8x8xf32>
    %20 = arith.addf %16, %19 : vector<8x8xf32>
    %c0_20 = arith.constant 0 : index
    %c0_21 = arith.constant 0 : index
    %c0_22 = arith.constant 0 : index
    %21 = vector.load %arg8[%c0_20, %c0_21, %c0_22] : memref<4x32x8xf32, #tpu.memory_space<vmem>>, vector<1x32x8xf32>
    %22 = vector.shape_cast %21 : vector<1x32x8xf32> to vector<32x8xf32>
    %cst_23 = arith.constant dense<0.000000e+00> : vector<8x8xf32>
    %23 = tpu.matmul %3, %22, %cst_23 {dimension_numbers = #tpu.dot_dimension_numbers<[1], [0], [0], [1], [0, 0, 1, 1], [], []>} : vector<8x32xf32>, vector<32x8xf32>, vector<8x8xf32> -> vector<8x8xf32>
    %c0_24 = arith.constant 0 : index
    %c0_25 = arith.constant 0 : index
    %c0_26 = arith.constant 0 : index
    %24 = vector.load %arg9[%c0_24, %c0_25, %c0_26] : memref<4x1x8xf32, #tpu.memory_space<vmem>>, vector<1x1x8xf32>
    %25 = vector.shape_cast %24 : vector<1x1x8xf32> to vector<1x8xf32>
    %26 = vector.broadcast %25 : vector<1x8xf32> to vector<8x8xf32>
    %27 = arith.addf %23, %26 : vector<8x8xf32>
    %cst_27 = arith.constant dense<0.000000e+00> : vector<8x8xf32>
    %28 = tpu.matmul %13, %20, %cst_27 {dimension_numbers = #tpu.dot_dimension_numbers<[1], [1], [0], [0], [0, 0, 1, 0], [], []>} : vector<8x8xf32>, vector<8x8xf32>, vector<8x8xf32> -> vector<8x8xf32>
    %cst_28 = arith.constant dense<0xFF800000> : vector<8xf32>
    %29 = vector.multi_reduction <maximumf>, %28, %cst_28 [1] : vector<8x8xf32> to vector<8xf32>
    %30 = vector.shape_cast %29 : vector<8xf32> to vector<8x1xf32>
    %31 = vector.broadcast %30 : vector<8x1xf32> to vector<8x8xf32>
    %32 = arith.subf %28, %31 : vector<8x8xf32>
    %33 = math.exp %32 : vector<8x8xf32>
    %cst_29 = arith.constant dense<0.000000e+00> : vector<8xf32>
    %34 = vector.multi_reduction <add>, %33, %cst_29 [1] : vector<8x8xf32> to vector<8xf32>
    %35 = vector.shape_cast %34 : vector<8xf32> to vector<8x1xf32>
    %36 = tpu.reciprocal %35 {approx = true} : vector<8x1xf32> -> vector<8x1xf32>
    %37 = vector.broadcast %36 : vector<8x1xf32> to vector<8x8xf32>
    %38 = arith.mulf %33, %37 : vector<8x8xf32>
    %cst_30 = arith.constant dense<0.000000e+00> : vector<8x8xf32>
    %39 = tpu.matmul %38, %27, %cst_30 {dimension_numbers = #tpu.dot_dimension_numbers<[1], [0], [0], [1], [0, 0, 1, 1], [], []>} : vector<8x8xf32>, vector<8x8xf32>, vector<8x8xf32> -> vector<8x8xf32>
    %c0_31 = arith.constant 0 : index
    %c0_32 = arith.constant 0 : index
    %c0_33 = arith.constant 0 : index
    %40 = vector.load %arg10[%c0_31, %c0_32, %c0_33] : memref<4x8x32xf32, #tpu.memory_space<vmem>>, vector<1x8x32xf32>
    %41 = vector.shape_cast %40 : vector<1x8x32xf32> to vector<8x32xf32>
    %cst_34 = arith.constant dense<0.000000e+00> : vector<8x32xf32>
    %42 = tpu.matmul %39, %41, %cst_34 {dimension_numbers = #tpu.dot_dimension_numbers<[1], [0], [0], [1], [0, 0, 1, 1], [], []>} : vector<8x8xf32>, vector<8x32xf32>, vector<8x32xf32> -> vector<8x32xf32>
    %43 = arith.addf %4, %42 : vector<8x32xf32>
    %c1 = arith.constant 1 : index
    %c0_35 = arith.constant 0 : index
    %c0_36 = arith.constant 0 : index
    %44 = vector.load %arg4[%c1, %c0_35, %c0_36] : memref<4x32x8xf32, #tpu.memory_space<vmem>>, vector<1x32x8xf32>
    %45 = vector.shape_cast %44 : vector<1x32x8xf32> to vector<32x8xf32>
    %cst_37 = arith.constant dense<0.000000e+00> : vector<8x8xf32>
    %46 = tpu.matmul %1, %45, %cst_37 {dimension_numbers = #tpu.dot_dimension_numbers<[1], [0], [0], [1], [0, 0, 1, 1], [], []>} : vector<8x32xf32>, vector<32x8xf32>, vector<8x8xf32> -> vector<8x8xf32>
    %c1_38 = arith.constant 1 : index
    %c0_39 = arith.constant 0 : index
    %c0_40 = arith.constant 0 : index
    %47 = vector.load %arg5[%c1_38, %c0_39, %c0_40] : memref<4x1x8xf32, #tpu.memory_space<vmem>>, vector<1x1x8xf32>
    %48 = vector.shape_cast %47 : vector<1x1x8xf32> to vector<1x8xf32>
    %49 = vector.broadcast %48 : vector<1x8xf32> to vector<8x8xf32>
    %50 = arith.addf %46, %49 : vector<8x8xf32>
    %cst_41 = arith.constant 0.353553385 : f32
    %51 = vector.broadcast %cst_41 : f32 to vector<8x8xf32>
    %52 = arith.mulf %50, %51 : vector<8x8xf32>
    %c1_42 = arith.constant 1 : index
    %c0_43 = arith.constant 0 : index
    %c0_44 = arith.constant 0 : index
    %53 = vector.load %arg6[%c1_42, %c0_43, %c0_44] : memref<4x32x8xf32, #tpu.memory_space<vmem>>, vector<1x32x8xf32>
    %54 = vector.shape_cast %53 : vector<1x32x8xf32> to vector<32x8xf32>
    %cst_45 = arith.constant dense<0.000000e+00> : vector<8x8xf32>
    %55 = tpu.matmul %3, %54, %cst_45 {dimension_numbers = #tpu.dot_dimension_numbers<[1], [0], [0], [1], [0, 0, 1, 1], [], []>} : vector<8x32xf32>, vector<32x8xf32>, vector<8x8xf32> -> vector<8x8xf32>
    %c1_46 = arith.constant 1 : index
    %c0_47 = arith.constant 0 : index
    %c0_48 = arith.constant 0 : index
    %56 = vector.load %arg7[%c1_46, %c0_47, %c0_48] : memref<4x1x8xf32, #tpu.memory_space<vmem>>, vector<1x1x8xf32>
    %57 = vector.shape_cast %56 : vector<1x1x8xf32> to vector<1x8xf32>
    %58 = vector.broadcast %57 : vector<1x8xf32> to vector<8x8xf32>
    %59 = arith.addf %55, %58 : vector<8x8xf32>
    %c1_49 = arith.constant 1 : index
    %c0_50 = arith.constant 0 : index
    %c0_51 = arith.constant 0 : index
    %60 = vector.load %arg8[%c1_49, %c0_50, %c0_51] : memref<4x32x8xf32, #tpu.memory_space<vmem>>, vector<1x32x8xf32>
    %61 = vector.shape_cast %60 : vector<1x32x8xf32> to vector<32x8xf32>
    %cst_52 = arith.constant dense<0.000000e+00> : vector<8x8xf32>
    %62 = tpu.matmul %3, %61, %cst_52 {dimension_numbers = #tpu.dot_dimension_numbers<[1], [0], [0], [1], [0, 0, 1, 1], [], []>} : vector<8x32xf32>, vector<32x8xf32>, vector<8x8xf32> -> vector<8x8xf32>
    %c1_53 = arith.constant 1 : index
    %c0_54 = arith.constant 0 : index
    %c0_55 = arith.constant 0 : index
    %63 = vector.load %arg9[%c1_53, %c0_54, %c0_55] : memref<4x1x8xf32, #tpu.memory_space<vmem>>, vector<1x1x8xf32>
    %64 = vector.shape_cast %63 : vector<1x1x8xf32> to vector<1x8xf32>
    %65 = vector.broadcast %64 : vector<1x8xf32> to vector<8x8xf32>
    %66 = arith.addf %62, %65 : vector<8x8xf32>
    %cst_56 = arith.constant dense<0.000000e+00> : vector<8x8xf32>
    %67 = tpu.matmul %52, %59, %cst_56 {dimension_numbers = #tpu.dot_dimension_numbers<[1], [1], [0], [0], [0, 0, 1, 0], [], []>} : vector<8x8xf32>, vector<8x8xf32>, vector<8x8xf32> -> vector<8x8xf32>
    %cst_57 = arith.constant dense<0xFF800000> : vector<8xf32>
    %68 = vector.multi_reduction <maximumf>, %67, %cst_57 [1] : vector<8x8xf32> to vector<8xf32>
    %69 = vector.shape_cast %68 : vector<8xf32> to vector<8x1xf32>
    %70 = vector.broadcast %69 : vector<8x1xf32> to vector<8x8xf32>
    %71 = arith.subf %67, %70 : vector<8x8xf32>
    %72 = math.exp %71 : vector<8x8xf32>
    %cst_58 = arith.constant dense<0.000000e+00> : vector<8xf32>
    %73 = vector.multi_reduction <add>, %72, %cst_58 [1] : vector<8x8xf32> to vector<8xf32>
    %74 = vector.shape_cast %73 : vector<8xf32> to vector<8x1xf32>
    %75 = tpu.reciprocal %74 {approx = true} : vector<8x1xf32> -> vector<8x1xf32>
    %76 = vector.broadcast %75 : vector<8x1xf32> to vector<8x8xf32>
    %77 = arith.mulf %72, %76 : vector<8x8xf32>
    %cst_59 = arith.constant dense<0.000000e+00> : vector<8x8xf32>
    %78 = tpu.matmul %77, %66, %cst_59 {dimension_numbers = #tpu.dot_dimension_numbers<[1], [0], [0], [1], [0, 0, 1, 1], [], []>} : vector<8x8xf32>, vector<8x8xf32>, vector<8x8xf32> -> vector<8x8xf32>
    %c1_60 = arith.constant 1 : index
    %c0_61 = arith.constant 0 : index
    %c0_62 = arith.constant 0 : index
    %79 = vector.load %arg10[%c1_60, %c0_61, %c0_62] : memref<4x8x32xf32, #tpu.memory_space<vmem>>, vector<1x8x32xf32>
    %80 = vector.shape_cast %79 : vector<1x8x32xf32> to vector<8x32xf32>
    %cst_63 = arith.constant dense<0.000000e+00> : vector<8x32xf32>
    %81 = tpu.matmul %78, %80, %cst_63 {dimension_numbers = #tpu.dot_dimension_numbers<[1], [0], [0], [1], [0, 0, 1, 1], [], []>} : vector<8x8xf32>, vector<8x32xf32>, vector<8x32xf32> -> vector<8x32xf32>
    %82 = arith.addf %43, %81 : vector<8x32xf32>
    %c2 = arith.constant 2 : index
    %c0_64 = arith.constant 0 : index
    %c0_65 = arith.constant 0 : index
    %83 = vector.load %arg4[%c2, %c0_64, %c0_65] : memref<4x32x8xf32, #tpu.memory_space<vmem>>, vector<1x32x8xf32>
    %84 = vector.shape_cast %83 : vector<1x32x8xf32> to vector<32x8xf32>
    %cst_66 = arith.constant dense<0.000000e+00> : vector<8x8xf32>
    %85 = tpu.matmul %1, %84, %cst_66 {dimension_numbers = #tpu.dot_dimension_numbers<[1], [0], [0], [1], [0, 0, 1, 1], [], []>} : vector<8x32xf32>, vector<32x8xf32>, vector<8x8xf32> -> vector<8x8xf32>
    %c2_67 = arith.constant 2 : index
    %c0_68 = arith.constant 0 : index
    %c0_69 = arith.constant 0 : index
    %86 = vector.load %arg5[%c2_67, %c0_68, %c0_69] : memref<4x1x8xf32, #tpu.memory_space<vmem>>, vector<1x1x8xf32>
    %87 = vector.shape_cast %86 : vector<1x1x8xf32> to vector<1x8xf32>
    %88 = vector.broadcast %87 : vector<1x8xf32> to vector<8x8xf32>
    %89 = arith.addf %85, %88 : vector<8x8xf32>
    %cst_70 = arith.constant 0.353553385 : f32
    %90 = vector.broadcast %cst_70 : f32 to vector<8x8xf32>
    %91 = arith.mulf %89, %90 : vector<8x8xf32>
    %c2_71 = arith.constant 2 : index
    %c0_72 = arith.constant 0 : index
    %c0_73 = arith.constant 0 : index
    %92 = vector.load %arg6[%c2_71, %c0_72, %c0_73] : memref<4x32x8xf32, #tpu.memory_space<vmem>>, vector<1x32x8xf32>
    %93 = vector.shape_cast %92 : vector<1x32x8xf32> to vector<32x8xf32>
    %cst_74 = arith.constant dense<0.000000e+00> : vector<8x8xf32>
    %94 = tpu.matmul %3, %93, %cst_74 {dimension_numbers = #tpu.dot_dimension_numbers<[1], [0], [0], [1], [0, 0, 1, 1], [], []>} : vector<8x32xf32>, vector<32x8xf32>, vector<8x8xf32> -> vector<8x8xf32>
    %c2_75 = arith.constant 2 : index
    %c0_76 = arith.constant 0 : index
    %c0_77 = arith.constant 0 : index
    %95 = vector.load %arg7[%c2_75, %c0_76, %c0_77] : memref<4x1x8xf32, #tpu.memory_space<vmem>>, vector<1x1x8xf32>
    %96 = vector.shape_cast %95 : vector<1x1x8xf32> to vector<1x8xf32>
    %97 = vector.broadcast %96 : vector<1x8xf32> to vector<8x8xf32>
    %98 = arith.addf %94, %97 : vector<8x8xf32>
    %c2_78 = arith.constant 2 : index
    %c0_79 = arith.constant 0 : index
    %c0_80 = arith.constant 0 : index
    %99 = vector.load %arg8[%c2_78, %c0_79, %c0_80] : memref<4x32x8xf32, #tpu.memory_space<vmem>>, vector<1x32x8xf32>
    %100 = vector.shape_cast %99 : vector<1x32x8xf32> to vector<32x8xf32>
    %cst_81 = arith.constant dense<0.000000e+00> : vector<8x8xf32>
    %101 = tpu.matmul %3, %100, %cst_81 {dimension_numbers = #tpu.dot_dimension_numbers<[1], [0], [0], [1], [0, 0, 1, 1], [], []>} : vector<8x32xf32>, vector<32x8xf32>, vector<8x8xf32> -> vector<8x8xf32>
    %c2_82 = arith.constant 2 : index
    %c0_83 = arith.constant 0 : index
    %c0_84 = arith.constant 0 : index
    %102 = vector.load %arg9[%c2_82, %c0_83, %c0_84] : memref<4x1x8xf32, #tpu.memory_space<vmem>>, vector<1x1x8xf32>
    %103 = vector.shape_cast %102 : vector<1x1x8xf32> to vector<1x8xf32>
    %104 = vector.broadcast %103 : vector<1x8xf32> to vector<8x8xf32>
    %105 = arith.addf %101, %104 : vector<8x8xf32>
    %cst_85 = arith.constant dense<0.000000e+00> : vector<8x8xf32>
    %106 = tpu.matmul %91, %98, %cst_85 {dimension_numbers = #tpu.dot_dimension_numbers<[1], [1], [0], [0], [0, 0, 1, 0], [], []>} : vector<8x8xf32>, vector<8x8xf32>, vector<8x8xf32> -> vector<8x8xf32>
    %cst_86 = arith.constant dense<0xFF800000> : vector<8xf32>
    %107 = vector.multi_reduction <maximumf>, %106, %cst_86 [1] : vector<8x8xf32> to vector<8xf32>
    %108 = vector.shape_cast %107 : vector<8xf32> to vector<8x1xf32>
    %109 = vector.broadcast %108 : vector<8x1xf32> to vector<8x8xf32>
    %110 = arith.subf %106, %109 : vector<8x8xf32>
    %111 = math.exp %110 : vector<8x8xf32>
    %cst_87 = arith.constant dense<0.000000e+00> : vector<8xf32>
    %112 = vector.multi_reduction <add>, %111, %cst_87 [1] : vector<8x8xf32> to vector<8xf32>
    %113 = vector.shape_cast %112 : vector<8xf32> to vector<8x1xf32>
    %114 = tpu.reciprocal %113 {approx = true} : vector<8x1xf32> -> vector<8x1xf32>
    %115 = vector.broadcast %114 : vector<8x1xf32> to vector<8x8xf32>
    %116 = arith.mulf %111, %115 : vector<8x8xf32>
    %cst_88 = arith.constant dense<0.000000e+00> : vector<8x8xf32>
    %117 = tpu.matmul %116, %105, %cst_88 {dimension_numbers = #tpu.dot_dimension_numbers<[1], [0], [0], [1], [0, 0, 1, 1], [], []>} : vector<8x8xf32>, vector<8x8xf32>, vector<8x8xf32> -> vector<8x8xf32>
    %c2_89 = arith.constant 2 : index
    %c0_90 = arith.constant 0 : index
    %c0_91 = arith.constant 0 : index
    %118 = vector.load %arg10[%c2_89, %c0_90, %c0_91] : memref<4x8x32xf32, #tpu.memory_space<vmem>>, vector<1x8x32xf32>
    %119 = vector.shape_cast %118 : vector<1x8x32xf32> to vector<8x32xf32>
    %cst_92 = arith.constant dense<0.000000e+00> : vector<8x32xf32>
    %120 = tpu.matmul %117, %119, %cst_92 {dimension_numbers = #tpu.dot_dimension_numbers<[1], [0], [0], [1], [0, 0, 1, 1], [], []>} : vector<8x8xf32>, vector<8x32xf32>, vector<8x32xf32> -> vector<8x32xf32>
    %121 = arith.addf %82, %120 : vector<8x32xf32>
    %c3 = arith.constant 3 : index
    %c0_93 = arith.constant 0 : index
    %c0_94 = arith.constant 0 : index
    %122 = vector.load %arg4[%c3, %c0_93, %c0_94] : memref<4x32x8xf32, #tpu.memory_space<vmem>>, vector<1x32x8xf32>
    %123 = vector.shape_cast %122 : vector<1x32x8xf32> to vector<32x8xf32>
    %cst_95 = arith.constant dense<0.000000e+00> : vector<8x8xf32>
    %124 = tpu.matmul %1, %123, %cst_95 {dimension_numbers = #tpu.dot_dimension_numbers<[1], [0], [0], [1], [0, 0, 1, 1], [], []>} : vector<8x32xf32>, vector<32x8xf32>, vector<8x8xf32> -> vector<8x8xf32>
    %c3_96 = arith.constant 3 : index
    %c0_97 = arith.constant 0 : index
    %c0_98 = arith.constant 0 : index
    %125 = vector.load %arg5[%c3_96, %c0_97, %c0_98] : memref<4x1x8xf32, #tpu.memory_space<vmem>>, vector<1x1x8xf32>
    %126 = vector.shape_cast %125 : vector<1x1x8xf32> to vector<1x8xf32>
    %127 = vector.broadcast %126 : vector<1x8xf32> to vector<8x8xf32>
    %128 = arith.addf %124, %127 : vector<8x8xf32>
    %cst_99 = arith.constant 0.353553385 : f32
    %129 = vector.broadcast %cst_99 : f32 to vector<8x8xf32>
    %130 = arith.mulf %128, %129 : vector<8x8xf32>
    %c3_100 = arith.constant 3 : index
    %c0_101 = arith.constant 0 : index
    %c0_102 = arith.constant 0 : index
    %131 = vector.load %arg6[%c3_100, %c0_101, %c0_102] : memref<4x32x8xf32, #tpu.memory_space<vmem>>, vector<1x32x8xf32>
    %132 = vector.shape_cast %131 : vector<1x32x8xf32> to vector<32x8xf32>
    %cst_103 = arith.constant dense<0.000000e+00> : vector<8x8xf32>
    %133 = tpu.matmul %3, %132, %cst_103 {dimension_numbers = #tpu.dot_dimension_numbers<[1], [0], [0], [1], [0, 0, 1, 1], [], []>} : vector<8x32xf32>, vector<32x8xf32>, vector<8x8xf32> -> vector<8x8xf32>
    %c3_104 = arith.constant 3 : index
    %c0_105 = arith.constant 0 : index
    %c0_106 = arith.constant 0 : index
    %134 = vector.load %arg7[%c3_104, %c0_105, %c0_106] : memref<4x1x8xf32, #tpu.memory_space<vmem>>, vector<1x1x8xf32>
    %135 = vector.shape_cast %134 : vector<1x1x8xf32> to vector<1x8xf32>
    %136 = vector.broadcast %135 : vector<1x8xf32> to vector<8x8xf32>
    %137 = arith.addf %133, %136 : vector<8x8xf32>
    %c3_107 = arith.constant 3 : index
    %c0_108 = arith.constant 0 : index
    %c0_109 = arith.constant 0 : index
    %138 = vector.load %arg8[%c3_107, %c0_108, %c0_109] : memref<4x32x8xf32, #tpu.memory_space<vmem>>, vector<1x32x8xf32>
    %139 = vector.shape_cast %138 : vector<1x32x8xf32> to vector<32x8xf32>
    %cst_110 = arith.constant dense<0.000000e+00> : vector<8x8xf32>
    %140 = tpu.matmul %3, %139, %cst_110 {dimension_numbers = #tpu.dot_dimension_numbers<[1], [0], [0], [1], [0, 0, 1, 1], [], []>} : vector<8x32xf32>, vector<32x8xf32>, vector<8x8xf32> -> vector<8x8xf32>
    %c3_111 = arith.constant 3 : index
    %c0_112 = arith.constant 0 : index
    %c0_113 = arith.constant 0 : index
    %141 = vector.load %arg9[%c3_111, %c0_112, %c0_113] : memref<4x1x8xf32, #tpu.memory_space<vmem>>, vector<1x1x8xf32>
    %142 = vector.shape_cast %141 : vector<1x1x8xf32> to vector<1x8xf32>
    %143 = vector.broadcast %142 : vector<1x8xf32> to vector<8x8xf32>
    %144 = arith.addf %140, %143 : vector<8x8xf32>
    %cst_114 = arith.constant dense<0.000000e+00> : vector<8x8xf32>
    %145 = tpu.matmul %130, %137, %cst_114 {dimension_numbers = #tpu.dot_dimension_numbers<[1], [1], [0], [0], [0, 0, 1, 0], [], []>} : vector<8x8xf32>, vector<8x8xf32>, vector<8x8xf32> -> vector<8x8xf32>
    %cst_115 = arith.constant dense<0xFF800000> : vector<8xf32>
    %146 = vector.multi_reduction <maximumf>, %145, %cst_115 [1] : vector<8x8xf32> to vector<8xf32>
    %147 = vector.shape_cast %146 : vector<8xf32> to vector<8x1xf32>
    %148 = vector.broadcast %147 : vector<8x1xf32> to vector<8x8xf32>
    %149 = arith.subf %145, %148 : vector<8x8xf32>
    %150 = math.exp %149 : vector<8x8xf32>
    %cst_116 = arith.constant dense<0.000000e+00> : vector<8xf32>
    %151 = vector.multi_reduction <add>, %150, %cst_116 [1] : vector<8x8xf32> to vector<8xf32>
    %152 = vector.shape_cast %151 : vector<8xf32> to vector<8x1xf32>
    %153 = tpu.reciprocal %152 {approx = true} : vector<8x1xf32> -> vector<8x1xf32>
    %154 = vector.broadcast %153 : vector<8x1xf32> to vector<8x8xf32>
    %155 = arith.mulf %150, %154 : vector<8x8xf32>
    %cst_117 = arith.constant dense<0.000000e+00> : vector<8x8xf32>
    %156 = tpu.matmul %155, %144, %cst_117 {dimension_numbers = #tpu.dot_dimension_numbers<[1], [0], [0], [1], [0, 0, 1, 1], [], []>} : vector<8x8xf32>, vector<8x8xf32>, vector<8x8xf32> -> vector<8x8xf32>
    %c3_118 = arith.constant 3 : index
    %c0_119 = arith.constant 0 : index
    %c0_120 = arith.constant 0 : index
    %157 = vector.load %arg10[%c3_118, %c0_119, %c0_120] : memref<4x8x32xf32, #tpu.memory_space<vmem>>, vector<1x8x32xf32>
    %158 = vector.shape_cast %157 : vector<1x8x32xf32> to vector<8x32xf32>
    %cst_121 = arith.constant dense<0.000000e+00> : vector<8x32xf32>
    %159 = tpu.matmul %156, %158, %cst_121 {dimension_numbers = #tpu.dot_dimension_numbers<[1], [0], [0], [1], [0, 0, 1, 1], [], []>} : vector<8x8xf32>, vector<8x32xf32>, vector<8x32xf32> -> vector<8x32xf32>
    %160 = arith.addf %121, %159 : vector<8x32xf32>
    %c0_122 = arith.constant 0 : index
    %c0_123 = arith.constant 0 : index
    %161 = vector.load %arg11[%c0_122, %c0_123] : memref<1x32xf32, #tpu.memory_space<vmem>>, vector<1x32xf32>
    %162 = vector.broadcast %161 : vector<1x32xf32> to vector<8x32xf32>
    %163 = arith.addf %160, %162 : vector<8x32xf32>
    %c0_124 = arith.constant 0 : index
    %c0_125 = arith.constant 0 : index
    %c0_126 = arith.constant 0 : index
    %164 = vector.load %arg12[%c0_124, %c0_125, %c0_126] : memref<1x8x32xf32, #tpu.memory_space<vmem>>, vector<1x8x32xf32>
    %165 = vector.shape_cast %164 : vector<1x8x32xf32> to vector<8x32xf32>
    %166 = vector.shape_cast %163 : vector<8x32xf32> to vector<1x8x32xf32>
    tpu.vector_store %arg12[%c0_124, %c0_125, %c0_126], %166 {strides = array<i32>} : memref<1x8x32xf32, #tpu.memory_space<vmem>>, vector<1x8x32xf32>,
    return
  }
  func.func @transform_0(%arg0: i32, %arg1: i32) -> (i32, i32, i32) {
    %c0_i32 = arith.constant 0 : i32
    %c0_i32_0 = arith.constant 0 : i32
    return %arg0, %arg1, %c0_i32 : i32, i32, i32
  }
  func.func @transform_1(%arg0: i32, %arg1: i32) -> (i32, i32, i32) {
    %c0_i32 = arith.constant 0 : i32
    %c0_i32_0 = arith.constant 0 : i32
    %c0_i32_1 = arith.constant 0 : i32
    return %arg0, %c0_i32, %c0_i32_0 : i32, i32, i32
  }
  func.func @transform_2(%arg0: i32, %arg1: i32) -> (i32, i32, i32) {
    %c0_i32 = arith.constant 0 : i32
    %c0_i32_0 = arith.constant 0 : i32
    %c0_i32_1 = arith.constant 0 : i32
    %c0_i32_2 = arith.constant 0 : i32
    return %c0_i32, %c0_i32_0, %c0_i32_1 : i32, i32, i32
  }
  func.func @transform_3(%arg0: i32, %arg1: i32) -> (i32, i32, i32) {
    %c0_i32 = arith.constant 0 : i32
    %c0_i32_0 = arith.constant 0 : i32
    %c0_i32_1 = arith.constant 0 : i32
    %c0_i32_2 = arith.constant 0 : i32
    return %c0_i32, %c0_i32_0, %c0_i32_1 : i32, i32, i32
  }
  func.func @transform_4(%arg0: i32, %arg1: i32) -> (i32, i32, i32) {
    %c0_i32 = arith.constant 0 : i32
    %c0_i32_0 = arith.constant 0 : i32
    %c0_i32_1 = arith.constant 0 : i32
    %c0_i32_2 = arith.constant 0 : i32
    return %c0_i32, %c0_i32_0, %c0_i32_1 : i32, i32, i32
  }
  func.func @transform_5(%arg0: i32, %arg1: i32) -> (i32, i32, i32) {
    %c0_i32 = arith.constant 0 : i32
    %c0_i32_0 = arith.constant 0 : i32
    %c0_i32_1 = arith.constant 0 : i32
    %c0_i32_2 = arith.constant 0 : i32
    return %c0_i32, %c0_i32_0, %c0_i32_1 : i32, i32, i32
  }
  func.func @transform_6(%arg0: i32, %arg1: i32) -> (i32, i32, i32) {
    %c0_i32 = arith.constant 0 : i32
    %c0_i32_0 = arith.constant 0 : i32
    %c0_i32_1 = arith.constant 0 : i32
    %c0_i32_2 = arith.constant 0 : i32
    return %c0_i32, %c0_i32_0, %c0_i32_1 : i32, i32, i32
  }
  func.func @transform_7(%arg0: i32, %arg1: i32) -> (i32, i32, i32) {
    %c0_i32 = arith.constant 0 : i32
    %c0_i32_0 = arith.constant 0 : i32
    %c0_i32_1 = arith.constant 0 : i32
    %c0_i32_2 = arith.constant 0 : i32
    return %c0_i32, %c0_i32_0, %c0_i32_1 : i32, i32, i32
  }
  func.func @transform_8(%arg0: i32, %arg1: i32) -> (i32, i32, i32) {
    %c0_i32 = arith.constant 0 : i32
    %c0_i32_0 = arith.constant 0 : i32
    %c0_i32_1 = arith.constant 0 : i32
    %c0_i32_2 = arith.constant 0 : i32
    return %c0_i32, %c0_i32_0, %c0_i32_1 : i32, i32, i32
  }
  func.func @transform_9(%arg0: i32, %arg1: i32) -> (i32, i32) {
    %c0_i32 = arith.constant 0 : i32
    %c0_i32_0 = arith.constant 0 : i32
    %c0_i32_1 = arith.constant 0 : i32
    return %c0_i32, %c0_i32_0 : i32, i32
  }
  func.func @transform_10(%arg0: i32, %arg1: i32) -> (i32, i32, i32) {
    %c0_i32 = arith.constant 0 : i32
    %c0_i32_0 = arith.constant 0 : i32
    return %arg0, %arg1, %c0_i32 : i32, i32, i32
  }
}

</mosaic_0001>

<bundles_post_ra>
// kernel: mha_forward.1
= control target key start
LH: loop header
LB: loop body
LE: loop exit
PB: predicated region body
PF: predicated region fallthrough
CT: control target
= control target key end

     0   :  { %s3561_s0 = inlined_call_operand.vmem [shape: f32[2,8,32], index: 0, kind: input, shape index: {}, may-alias: {0,1}]   ;;  %s3562_s1 = inlined_call_operand.vmem [shape: f32[2,8,32], index: 1, kind: input, shape index: {}, may-alias: {0,1}]   ;;  %s3563_s2 = inlined_call_operand.vmem [shape: f32[4,32,8], index: 2, kind: input, shape index: {}]   ;;  %s3564_s3 = inlined_call_operand.vmem [shape: f32[4,1,8], index: 3, kind: input, shape index: {}]   ;;  %s3565_s4 = inlined_call_operand.vmem [shape: f32[4,32,8], index: 4, kind: input, shape index: {}]   ;;  %s3566_s5 = inlined_call_operand.vmem [shape: f32[4,1,8], index: 5, kind: input, shape index: {}]   ;;  %s3567_s6 = inlined_call_operand.vmem [shape: f32[4,32,8], index: 6, kind: input, shape index: {}]   ;;  %s3568_s7 = inlined_call_operand.vmem [shape: f32[4,1,8], index: 7, kind: input, shape index: {}]   ;;  %s3569_s8 = inlined_call_operand.vmem [shape: f32[4,8,32], index: 8, kind: input, shape index: {}]   ;;  %s3570_s9 = inlined_call_operand.vmem [shape: f32[1,32], index: 9, kind: input, shape index: {}]   ;;  %s3571_s10 = inlined_call_operand.hbm [shape: f32[2,8,32], index: 10, kind: output, shape index: {}]  }
   0x1   :  { %3572 = sst [smem:[#allocation5_spill]] %s3561_s0 }
   0x2   :  { %15 = vsyncpa [#allocation3], 0 }
   0x3   :  { %17 = vsyncpa [#allocation3 + $0x1], 0  ;;  %s3111_s13 = smov 0   ;;  %s3113_s14 = smov 0  }
   0x4   :  { %s3115_s15 = smov 0   ;;  %s3117_s16 = smov 0  }
   0x5   :  { %s3119_s17 = smov 0   ;;  %s3121_s18 = smov 0  }
   0x6 LB: > { %s2449_s19 = sadd.s32 4294967295, %s3050_s18   ;;  %s2450_s20 = sadd.s32 4294967294, %s3050_s18   ;;  %s3050_s18 = sphi %s3121_s18, %s23_s18   ;;  %s3046_s17 = sphi %s3119_s17, %s3580_s17   ;;  %s3042_s16 = sphi %s3117_s16, %s3579_s16   ;;  %s3038_s15 = sphi %s3115_s15, %s3578_s15   ;;  %s3034_s14 = sphi %s3113_s14, %s3577_s14   ;;  %s3030_s13 = sphi %s3111_s13, %s3576_s13  }
   0x7   : > { %s35_s21 = sadd.s32 1, %s3046_s17  ;;  %s266_s22 = sadd.s32 1, %s3038_s15 }
   0x8   : > { %p37_p0 = scmp.ge.s32.totalorder %s35_s21, 2  ;;  %p276_p1 = scmp.ne.s32.totalorder %s3038_s15, %s3034_s14 }
   0x9   : > { %p277_p2 = scmp.eq.s32.totalorder %s2449_s19, 1  ;;  %p282_p3 = scmp.ne.s32.totalorder %s3034_s14, %s3030_s13 }
   0xa   : > { %s3582_s21 = smov (%p37_p0, %s35_s21), 0  ;;  %p283_p5 = scmp.eq.s32.totalorder %s2450_s20, 1 }
   0xb   : > { %p3151_p4 = por %p277_p2, %p276_p1  ;;  %s261_s24 = ssub.s32 %s3046_s17, %s3582_s21 }
   0xc   : > { %p2453_p6 = scmp.ge.s32.totalorder %s3050_s18, 1  ;;  %p264_p7 = scmp.eq.s32.totalorder %s261_s24, 0 }
   0xd   : > { %p3158_p8 = por %p283_p5, %p282_p3  ;;  %p342_p9 = scmp.lt.s32.totalorder %s3050_s18, 3 }
   0xe   : > { %s3164_s26 = scalar_select %p264_p7, %s3038_s15, %s266_s22  }
   0xf   : > { %p343_p10 = pnand %p2453_p6, %p342_p9 }
  0x10   : > { %v399_v0 = vld [vmem:[%s3563_s2] sm:$0xff] (!%p343_p10)  ;;  %v400_v1 = vld [vmem:[%s3563_s2 + $0x8] sm:$0xff] (!%p343_p10)  ;;  %v3052_v3 = vmov (!%p343_p10), 0.0|0.0   ;;  %v401_v6 = vld [vmem:[%s3563_s2 + $0x10] sm:$0xff] (!%p343_p10)  ;;  %p386_p11 = scmp.lt.s32.totalorder (!%p343_p10), %s3042_s16, 1  ;;  %vm3053_vm0 = vmmov (!%p343_p10), 0  }
  0x11   : > { %346 = sbr.rel (%p343_p10) target bundleno = 3891 (0xf33), region = 60  ;;  %v485_v2 = vld [vmem:[%s3565_s4] sm:$0xff] (!%p343_p10)  ;;  %2826 = vmatprep.subr.bf16.mxu0 (!%p343_p10), %v3052_v3  ;;  %2832 = vmatprep.subr.bf16.mxu1 (!%p343_p10), %v3052_v3  ;;  %v2827_v4 = vpack.c.bf16 (!%p343_p10), %v400_v1, %v399_v0  ;;  %v486_v5 = vld [vmem:[%s3565_s4 + $0x8] sm:$0xff] (!%p343_p10)  ;;  %v402_v7 = vld [vmem:[%s3563_s2 + $0x18] sm:$0xff] (!%p343_p10)  ;;  %v3054_v11 = vmov (!%p343_p10), 0.0   ;;  %s3575_s0 = sld [smem:[#allocation5_spill]] (!%p343_p10) }
  0x12   : > { %v2833_v8 = vpack.c.bf16 (!%p343_p10), %v486_v5, %v485_v2  ;;  %v487_v9 = vld [vmem:[%s3565_s4 + $0x10] sm:$0xff] (!%p343_p10)  ;;  %v488_v10 = vld [vmem:[%s3565_s4 + $0x18] sm:$0xff] (!%p343_p10)  ;;  %2642 = vmatprep.mubr.msk.f32.mxu0 (!%p343_p10), %vm3053_vm0, %v3054_v11  ;;  %2653 = vmatprep.mubr.msk.f32.mxu1 (!%p343_p10), %vm3053_vm0, %v3054_v11  ;;  %v2830_v12 = vpack.c.bf16 (!%p343_p10), %v402_v7, %v401_v6  ;;  %vm410_vm1 = vcmask (!%p343_p10), 261120   ;;  %v2457_v16 = vld [vmem:[%s3564_s3] ss:$0 sm:$0xff] (!%p343_p10)  ;;  %vm650_vm2 = vcmask (!%p343_p10), 64512  }
  0x13   : > { %2828 = vmatpush3.bf16.msra.mxu0 (!%p343_p10), %v2827_v4  ;;  %v2836_v13 = vpack.c.bf16 (!%p343_p10), %v488_v10, %v487_v9  ;;  %v2459_v17 = vld [vmem:[%s3566_s5] ss:$0 sm:$0xff] (!%p343_p10)  ;;  %v570_v26 = vld [vmem:[%s3567_s6 + $0x8] sm:$0xff] (!%p343_p10)  ;;  %v571_v27 = vld [vmem:[%s3567_s6 + $0x10] sm:$0xff] (!%p343_p10) }
  0x14   : > { %2834 = vmatpush3.bf16.msra.mxu1 (!%p343_p10), %v2833_v8  ;;  %2829 = vmatprep.subr.bf16.mxu0 (!%p343_p10), %v3052_v3  ;;  %v569_v25 = vld [vmem:[%s3567_s6] sm:$0xff] (!%p343_p10)  ;;  %v572_v29 = vld [vmem:[%s3567_s6 + $0x18] sm:$0xff] (!%p343_p10)  ;;  %v2467_v44 = vld [vmem:[%s3563_s2 + $0x28] sm:$0xff] (!%p343_p10) }
  0x15   : > { %2835 = vmatprep.subr.bf16.mxu1 (!%p343_p10), %v3052_v3  ;;  %v2839_v28 = vpack.c.bf16 (!%p343_p10), %v570_v26, %v569_v25  ;;  %v2842_v30 = vpack.c.bf16 (!%p343_p10), %v572_v29, %v571_v27  ;;  %v2461_v40 = vld [vmem:[%s3568_s7] ss:$0 sm:$0xff] (!%p343_p10)  ;;  %v2468_v46 = vld [vmem:[%s3563_s2 + $0x30] sm:$0xff] (!%p343_p10)  ;;  %v2469_v47 = vld [vmem:[%s3563_s2 + $0x38] sm:$0xff] (!%p343_p10) }
  0x16   : > { %v2466_v43 = vld [vmem:[%s3563_s2 + $0x20] sm:$0xff] (!%p343_p10)  ;;  %v2848_v48 = vpack.c.bf16 (!%p343_p10), %v2469_v47, %v2468_v46  ;;  %v2474_v51 = vld [vmem:[%s3565_s4 + $0x28] sm:$0xff] (!%p343_p10)  ;;  %v2475_v55 = vld [vmem:[%s3565_s4 + $0x30] sm:$0xff] (!%p343_p10) }
  0x17   : > { %2831 = vmatpush3.bf16.msra.mxu0 (!%p343_p10), %v2830_v12  ;;  %v2845_v45 = vpack.c.bf16 (!%p343_p10), %v2467_v44, %v2466_v43  ;;  %v2473_v50 = vld [vmem:[%s3565_s4 + $0x20] sm:$0xff] (!%p343_p10)  ;;  %v2476_v56 = vld [vmem:[%s3565_s4 + $0x38] sm:$0xff] (!%p343_p10)  ;;  %v2481_v7 = vld [vmem:[%s3567_s6 + $0x28] sm:$0xff] (!%p343_p10) }
  0x18   : > { %s387_s19 = scalar_select %p386_p11, %s3042_s16, 1  ;;  %2837 = vmatpush3.bf16.msra.mxu1 %v2836_v13  ;;  %2838 = vmatprep.subr.bf16.mxu0 %v3052_v3  ;;  %v2851_v53 = vpack.c.bf16 %v2474_v51, %v2473_v50  ;;  %v2854_v57 = vpack.c.bf16 %v2476_v56, %v2475_v55  ;;  %v2471_v62 = vld [vmem:[%s3564_s3 + $0x1] ss:$0 sm:$0xff]  ;;  %v2482_v8 = vld [vmem:[%s3567_s6 + $0x30] sm:$0xff]  ;;  %v2483_v10 = vld [vmem:[%s3567_s6 + $0x38] sm:$0xff] }
  0x19   : > { %2667 = vmatprep.subr.mxu1 %v3054_v11  ;;  %v2478_v0 = vld [vmem:[%s3566_s5 + $0x1] ss:$0 sm:$0xff]  ;;  %v2860_v12 = vpack.c.bf16 %v2483_v10, %v2482_v8  ;;  %v2490_v27 = vld [vmem:[%s3569_s8 + $0x8] sm:$0xff]  ;;  %v2498_v55 = vld [vmem:[%s3564_s3 + $0x2] ss:$0 sm:$0xff] }
  0x1a   : > { %s2455_s20 = sshll.u32 %s387_s19, 3  ;;  %v2480_v6 = vld [vmem:[%s3567_s6 + $0x20] sm:$0xff]  ;;  %s383_s19 = sand.u32 1, %s3034_s14  }
  0x1b   : > { %s392_s27 = scalar_lea.vmem %s3575_s0, %s2455_s20  ;;  %s396_s30 = scalar_lea.vmem %s3562_s1, %s2455_s20  ;;  %v2857_v9 = vpack.c.bf16 %v2481_v7, %v2480_v6 }
  0x1c   : > { %v3206_v14 = vld [vmem:[%s392_s27] sm:$0xff]  ;;  %s2454_s20 = sshll.u32 %s383_s19, 3  ;;  %s2547_s27 = sshll.u32 %s3042_s16, 7 }
  0x1d   : > { %v3208_v15 = vld [vmem:[%s396_s30] sm:$0xff]  ;;  %2643 = vmatmul.mubr.msk.f32.vlgmr.msra.gmra.mrb[0].mxu0 %vm410_vm1, %v3206_v14  ;;  %s385_s28 = scalar_lea.vmem [#allocation2], %s2454_s20  ;;  %s3513_s12 = scalar_lea.hbm %s3571_s10, %s2547_s27 }
  0x1e   : > { %2654 = vmatmul.mubr.msk.f32.vlgmr.msra.gmra.mrb[0].mxu1 %vm410_vm1, %v3208_v15  ;;  %2664 = vmatprep.mubr.msk.f32.mxu0 %vm3053_vm0, %v3054_v11  ;;  %s2366_s29 = sshll.u32 %s385_s28, 4  ;;  %s2352_s22 = scalar_lea.sflag [#allocation3], %s383_s19  ;;  %s3515_s29 = int_to_ptr.vmem [resolvable:$true] %s2366_s29 }
  0x1f   : > { %2669 = vmatprep.mubr.msk.f32.mxu1 %vm3053_vm0, %v3054_v11  ;;  %2840 = vmatpush3.bf16.msra.mxu0 %v2839_v28  ;;  %s2972_s24 = scalar_lea.vmem %s3515_s29, 128  ;;  %s3055_s16 = smov [#allocation2]  }
  0x20   : > { %2841 = vmatprep.subr.bf16.mxu0 %v3052_v3  ;;  %p2973_p12 = scmp.ne.s32.totalorder %s3515_s29, %s2972_s24  ;;  %s2976_s20 = sshll.u32 %s3055_s16, 4  ;;  %s2977_s20 = int_to_ptr.vmem [resolvable:$false] %s2976_s20 }
  0x21   : > { %s2978_s0 = scalar_lea.vmem %s2977_s20, 256  ;;  %p2979_p1 = scmp.lt.s32.totalorder %s3515_s29, %s2977_s20 }
  0x22   : > { %p2974_p13 = pnand %p2973_p12, %p3151_p4  ;;  %p2980_p2 = scmp.lt.s32.totalorder %s2978_s0, %s2972_s24 }
  0x23   : > { %2843 = vmatpush3.bf16.msra.mxu0 %v2842_v30 }
  0x24   : > { %2844 = vmatprep.subr.bf16.mxu0 %v3052_v3  ;;  %p2975_p0 = pneg %p2974_p13  ;;  %p2981_p3 = por %p2980_p2, %p2979_p1 }
  0x26   : > { %2665 = vmatmul.mubr.msk.f32.vlgmr.msra.gmra.mrb[2].mxu0 %vm410_vm1, %v3208_v15  ;;  %p2982_p5 = pnand %p2981_p3, %p2975_p0 }
  0x27   : > { %2685 = vmatprep.mubr.msk.f32.mxu0 %vm3053_vm0, %v3054_v11  ;;  %2846 = vmatpush3.bf16.msra.mxu0 %v2845_v45 }
  0x28   : > { %2847 = vmatprep.subr.bf16.mxu0 %v3052_v3 }
  0x2b   : > { %2849 = vmatpush3.bf16.msra.mxu0 %v2848_v48  ;;  %v2505_v48 = vld [vmem:[%s3566_s5 + $0x2] ss:$0 sm:$0xff] }
  0x2c   : > { %2856 = vmatprep.subr.bf16.mxu0 %v3052_v3 }
  0x2e   : > { %2686 = vmatmul.mubr.msk.f32.vlgmr.msra.gmra.mrb[4].mxu0 %vm410_vm1, %v3206_v14 }
  0x2f   : > { %2707 = vmatprep.mubr.msk.f32.mxu0 %vm3053_vm0, %v3054_v11  ;;  %2858 = vmatpush3.bf16.msra.mxu0 %v2857_v9 }
  0x30   : > { %2859 = vmatprep.subr.bf16.mxu0 %v3052_v3 }
  0x33   : > { %2861 = vmatpush3.bf16.msra.mxu0 %v2860_v12 }
  0x34   : > { %2720 = vmatprep.subr.mxu0 %v3054_v11 }
  0x36   : > { %2708 = vmatmul.mubr.msk.f32.vlgmr.msra.gmra.mrb[6].mxu0 %vm410_vm1, %v3208_v15 }
  0x37   : > { %2722 = vmatprep.mubr.msk.f32.mxu0 %vm3053_vm0, %v3054_v11  ;;  %2721 = vmatpush3.msra.mxu0 %v2490_v27 }
  0x38   : > { %2862 = vmatprep.subr.bf16.mxu0 %v3052_v3 }
  0xf0   : > { %v480_v18 = vpop.f32.mrb[0].mxu0 }
  0xf1   : > { %v481_v19 = vadd.f32 %v2457_v16, %v480_v18  ;;  %v565_v20 = vpop.f32.mrb[0].mxu1  ;;  %v2644_v21 = vpop.f32.mrb[1].mxu0 }
  0xf2   : > { %v566_v22 = vadd.f32 %v2459_v17, %v565_v20  ;;  %v2655_v23 = vpop.f32.mrb[1].mxu1 }
  0xf3   : > { %v484_v24 = vmul.f32 0.35355338, %v481_v19 }
  0xf4   : > { %2668 = vmatpush3.xpose.msk.msra.mxu1 %vm650_vm2, %v566_v22 }
  0xf5   : > { %2672 = vmatprep.subr.mxu1 %v3054_v11 }
  0xf7   : > { %2670 = vmatmul.mubr.msk.f32.vlgmr.msra.gmra.mrb[2].mxu1 %vm650_vm2, %v484_v24  ;;  %v2485_v24 = vld [vmem:[%s3568_s7 + $0x1] ss:$0 sm:$0xff] }
  0xf8   : > { %2674 = vmatprep.mubr.msk.f32.mxu1 %vm3053_vm0, %v3054_v11 }
  0xf9   : > { %v646_v39 = vpop.f32.mrb[2].mxu0 }
  0xfa   : > { %v2666_v41 = vpop.f32.mrb[3].mxu0  ;;  %v647_v42 = vadd.f32 %v2461_v40, %v646_v39  ;;  %v2494_v39 = vld [vmem:[%s3563_s2 + $0x48] sm:$0xff] }
  0xfb   : > { %v2495_v41 = vld [vmem:[%s3563_s2 + $0x50] sm:$0xff] }
  0xfc   : > { %2673 = vmatpush3.msra.mxu1 %v647_v42  ;;  %v2496_v42 = vld [vmem:[%s3563_s2 + $0x58] sm:$0xff] }
  0xfd   : > { %2850 = vmatprep.subr.bf16.mxu1 %v3052_v3  ;;  %v2866_v45 = vpack.c.bf16 %v2496_v42, %v2495_v41  ;;  %v2531_v41 = vld [vmem:[%s3566_s5 + $0x3] ss:$0 sm:$0xff] }
 0x101   : > { %v891_v58 = vpop.f32.mrb[4].mxu0 }
 0x102   : > { %v2687_v59 = vpop.f32.mrb[5].mxu0  ;;  %v892_v63 = vadd.f32 %v2471_v62, %v891_v58  ;;  %v2509_v62 = vld [vmem:[%s3567_s6 + $0x50] sm:$0xff] }
 0x104   : > { %v895_v5 = vmul.f32 0.35355338, %v892_v63 }
 0x109   : > { %v1058_v23 = vpop.f32.mrb[6].mxu0 }
 0x10a   : > { %v2709_v25 = vpop.f32.mrb[7].mxu0  ;;  %v1059_v26 = vadd.f32 %v2485_v24, %v1058_v23  ;;  %v2520_v23 = vld [vmem:[%s3563_s2 + $0x68] sm:$0xff] }
 0x10b   : > { %v2521_v25 = vld [vmem:[%s3563_s2 + $0x70] sm:$0xff] }
 0x1ca   : > { %v723_v31 = vpop.f32.mrb[2].mxu1 }
 0x1cb   : > { %v2671_v32 = vpop.f32.mrb[3].mxu1  ;;  %v727_v33 = vsel %vm650_vm2, %v723_v31, -inf }
 0x1cc   : > { %728 = vmax.xlane.f32.xlu0 %v727_v33  ;;  %v2500_v32 = vld [vmem:[%s3565_s4 + $0x40] sm:$0xff]  ;;  %v2501_v33 = vld [vmem:[%s3565_s4 + $0x48] sm:$0xff] }
 0x259   : > { %v729_v34 = vpop.xlane.xlu0 %728 }
 0x25a   : > { %v730_v35 = vsub.f32 %v723_v31, %v729_v34  ;;  %v811_v31 = vld [vmem:[%s3569_s8] sm:$0xff]  ;;  %v2869_v34 = vpack.c.bf16 %v2501_v33, %v2500_v32 }
 0x25c   : > { %v731_v36 = vmul.f32 1.442695, %v730_v35  ;;  %v2502_v35 = vld [vmem:[%s3565_s4 + $0x50] sm:$0xff] }
 0x25e   : > { %2956 = vpow2.f32 %v731_v36  ;;  %v2503_v36 = vld [vmem:[%s3565_s4 + $0x58] sm:$0xff] }
 0x268   : > { %v2957_v37 = vpop.eup %2956 }
 0x269   : > { %v733_v38 = vsel %vm650_vm2, %v2957_v37, 0.0 }
 0x26a   : > { %734 = vadd.xlane.f32.xlu0 %v733_v38  ;;  %v2493_v38 = vld [vmem:[%s3563_s2 + $0x40] sm:$0xff] }
 0x26b   : > { %v2863_v40 = vpack.c.bf16 %v2494_v39, %v2493_v38 }
 0x2f7   : > { %v735_v49 = vpop.xlane.xlu0 %734 }
 0x2f8   : > { %2958 = vrcp.f32 %v735_v49 }
 0x302   : > { %v2959_v52 = vpop.eup %2958 }
 0x303   : > { %v737_v54 = vmul.f32 %v2959_v52, %v2957_v37  ;;  %v2872_v37 = vpack.c.bf16 %v2503_v36, %v2502_v35 }
 0x305   : > { %2675 = vmatmul.mubr.msk.f32.vlgmr.msra.gmra.mrb[4].mxu1 %vm650_vm2, %v737_v54 }
 0x306   : > { %2852 = vmatpush3.bf16.msra.mxu1 %v2851_v53  ;;  %2696 = vmatprep.mubr.msk.f32.mxu1 %vm3053_vm0, %v3054_v11 }
 0x307   : > { %2853 = vmatprep.subr.bf16.mxu1 %v3052_v3 }
 0x30a   : > { %2855 = vmatpush3.bf16.msra.mxu1 %v2854_v57 }
 0x30b   : > { %2710 = vmatprep.subr.mxu1 %v3054_v11 }
 0x30d   : > { %2697 = vmatmul.mubr.msk.f32.vlgmr.msra.gmra.mrb[6].mxu1 %vm410_vm1, %v3208_v15 }
 0x30e   : > { %2712 = vmatprep.mubr.msk.f32.mxu1 %vm3053_vm0, %v3054_v11 }
 0x3d8   : > { %v807_v60 = vpop.f32.mrb[4].mxu1 }
 0x3d9   : > { %v2676_v61 = vpop.f32.mrb[5].mxu1 }
 0x3da   : > { %v2508_v61 = vld [vmem:[%s3567_s6 + $0x48] sm:$0xff] }
 0x3e0   : > { %v975_v1 = vpop.f32.mrb[6].mxu1 }
 0x3e1   : > { %v976_v2 = vadd.f32 %v2478_v0, %v975_v1  ;;  %v2698_v4 = vpop.f32.mrb[7].mxu1  ;;  %v2510_v0 = vld [vmem:[%s3567_s6 + $0x58] sm:$0xff] }
 0x3e2   : > { %v2878_v1 = vpack.c.bf16 %v2510_v0, %v2509_v62  ;;  %v2543_v62 = vld [vmem:[%s3569_s8 + $0x18] sm:$0xff] }
 0x3e3   : > { %2711 = vmatpush3.xpose.msk.msra.mxu1 %vm650_vm2, %v976_v2 }
 0x3e4   : > { %2715 = vmatprep.subr.mxu1 %v3054_v11 }
 0x3e6   : > { %2713 = vmatmul.mubr.msk.f32.vlgmr.msra.gmra.mrb[8].mxu1 %vm650_vm2, %v895_v5 }
 0x3e7   : > { %2717 = vmatprep.mubr.msk.f32.mxu1 %vm3053_vm0, %v3054_v11  ;;  %2716 = vmatpush3.msra.mxu1 %v1059_v26  ;;  %v2522_v26 = vld [vmem:[%s3563_s2 + $0x78] sm:$0xff] }
 0x3e8   : > { %2725 = vmatprep.subr.mxu1 %v3054_v11  ;;  %v2884_v27 = vpack.c.bf16 %v2522_v26, %v2521_v25 }
 0x4b9   : > { %v1134_v13 = vpop.f32.mrb[8].mxu1 }
 0x4ba   : > { %v2714_v16 = vpop.f32.mrb[9].mxu1  ;;  %v1138_v17 = vsel %vm650_vm2, %v1134_v13, -inf }
 0x4bb   : > { %1139 = vmax.xlane.f32.xlu1 %v1138_v17 }
 0x548   : > { %v1140_v18 = vpop.xlane.xlu1 %1139 }
 0x549   : > { %v1141_v19 = vsub.f32 %v1134_v13, %v1140_v18  ;;  %v2512_v13 = vld [vmem:[%s3568_s7 + $0x2] ss:$0 sm:$0xff]  ;;  %v2517_v18 = vld [vmem:[%s3569_s8 + $0x10] sm:$0xff] }
 0x54b   : > { %v1142_v20 = vmul.f32 1.442695, %v1141_v19 }
 0x54d   : > { %2960 = vpow2.f32 %v1142_v20 }
 0x557   : > { %v2961_v21 = vpop.eup %2960 }
 0x558   : > { %v1144_v22 = vsel %vm650_vm2, %v2961_v21, 0.0 }
 0x559   : > { %1145 = vadd.xlane.f32.xlu1 %v1144_v22  ;;  %v2519_v22 = vld [vmem:[%s3563_s2 + $0x60] sm:$0xff] }
 0x55a   : > { %v2881_v24 = vpack.c.bf16 %v2520_v23, %v2519_v22 }
 0x5e6   : > { %v1146_v28 = vpop.xlane.xlu1 %1145 }
 0x5e7   : > { %2962 = vrcp.f32 %v1146_v28  ;;  %v2526_v28 = vld [vmem:[%s3565_s4 + $0x60] sm:$0xff] }
 0x5f1   : > { %v2963_v29 = vpop.eup %2962 }
 0x5f2   : > { %v1148_v30 = vmul.f32 %v2963_v29, %v2961_v21  ;;  %v2527_v29 = vld [vmem:[%s3565_s4 + $0x68] sm:$0xff] }
 0x5f4   : > { %2718 = vmatmul.mubr.msk.f32.vlgmr.msra.gmra.mrb[10].mxu1 %vm650_vm2, %v1148_v30  ;;  %v2887_v30 = vpack.c.bf16 %v2527_v29, %v2526_v28 }
 0x5f5   : > { %2726 = vmatpush3.msra.mxu1 %v811_v31  ;;  %2727 = vmatprep.mubr.msk.f32.mxu1 %vm3053_vm0, %v3054_v11  ;;  %v2528_v31 = vld [vmem:[%s3565_s4 + $0x70] sm:$0xff] }
 0x5f6   : > { %2868 = vmatprep.subr.bf16.mxu1 %v3052_v3 }
 0x5f8   : > { %2728 = vmatmul.mubr.msk.f32.vlgmr.msra.gmra.mrb[12].mxu1 %vm650_vm2, %v807_v60  ;;  %v2507_v60 = vld [vmem:[%s3567_s6 + $0x40] sm:$0xff] }
 0x5f9   : > { %2870 = vmatpush3.bf16.msra.mxu1 %v2869_v34  ;;  %2749 = vmatprep.mubr.msk.f32.mxu1 %vm3053_vm0, %v3054_v11  ;;  %v2875_v63 = vpack.c.bf16 %v2508_v61, %v2507_v60 }
 0x5fa   : > { %2871 = vmatprep.subr.bf16.mxu1 %v3052_v3 }
 0x5fd   : > { %2873 = vmatpush3.bf16.msra.mxu1 %v2872_v37 }
 0x5fe   : > { %2763 = vmatprep.subr.mxu1 %v3054_v11 }
 0x600   : > { %2750 = vmatmul.mubr.msk.f32.vlgmr.msra.gmra.mrb[14].mxu1 %vm410_vm1, %v3208_v15 }
 0x601   : > { %2765 = vmatprep.mubr.msk.f32.mxu1 %vm3053_vm0, %v3054_v11 }
 0x6c7   : > { %v1218_v43 = vpop.f32.mrb[10].mxu1 }
 0x6c8   : > { %v2719_v44 = vpop.f32.mrb[11].mxu1  ;;  %2723 = vmatmul.mubr.msk.f32.vlgmr.msra.gmra.mrb[8].mxu0 %vm650_vm2, %v1218_v43 }
 0x6c9   : > { %2864 = vmatpush3.bf16.msra.mxu0 %v2863_v40  ;;  %2738 = vmatprep.mubr.msk.f32.mxu0 %vm3053_vm0, %v3054_v11  ;;  %v2524_v40 = vld [vmem:[%s3564_s3 + $0x3] ss:$0 sm:$0xff] }
 0x6ca   : > { %2865 = vmatprep.subr.bf16.mxu0 %v3052_v3 }
 0x6cb   : > { %v1366_v46 = vpop.f32.mrb[12].mxu1 }
 0x6cc   : > { %v2729_v47 = vpop.f32.mrb[13].mxu1 }
 0x6cd   : > { %2867 = vmatpush3.bf16.msra.mxu0 %v2866_v45  ;;  %v2533_v47 = vld [vmem:[%s3567_s6 + $0x60] sm:$0xff] }
 0x6ce   : > { %2874 = vmatprep.subr.bf16.mxu0 %v3052_v3 }
 0x6d0   : > { %2739 = vmatmul.mubr.msk.f32.vlgmr.msra.gmra.mrb[10].mxu0 %vm410_vm1, %v3206_v14 }
 0x6d1   : > { %2760 = vmatprep.mubr.msk.f32.mxu0 %vm3053_vm0, %v3054_v11  ;;  %2876 = vmatpush3.bf16.msra.mxu0 %v2875_v63 }
 0x6d2   : > { %2877 = vmatprep.subr.bf16.mxu0 %v3052_v3 }
 0x6d3   : > { %v1533_v49 = vpop.f32.mrb[14].mxu1 }
 0x6d4   : > { %v1534_v50 = vadd.f32 %v2505_v48, %v1533_v49  ;;  %v2751_v51 = vpop.f32.mrb[15].mxu1  ;;  %v2534_v48 = vld [vmem:[%s3567_s6 + $0x68] sm:$0xff]  ;;  %v2535_v49 = vld [vmem:[%s3567_s6 + $0x70] sm:$0xff] }
 0x6d5   : > { %2879 = vmatpush3.bf16.msra.mxu0 %v2878_v1  ;;  %v2536_v51 = vld [vmem:[%s3567_s6 + $0x78] sm:$0xff] }
 0x6d6   : > { %2764 = vmatpush3.xpose.msk.msra.mxu1 %vm650_vm2, %v1534_v50  ;;  %2773 = vmatprep.subr.mxu0 %v3054_v11  ;;  %v2893_v50 = vpack.c.bf16 %v2534_v48, %v2533_v47 }
 0x6d7   : > { %2768 = vmatprep.subr.mxu1 %v3054_v11 }
 0x6d8   : > { %2761 = vmatmul.mubr.msk.f32.vlgmr.msra.gmra.mrb[12].mxu0 %vm410_vm1, %v3208_v15 }
 0x6d9   : > { %2775 = vmatprep.mubr.msk.f32.mxu0 %vm3053_vm0, %v3054_v11  ;;  %2774 = vmatpush3.msra.mxu0 %v2517_v18 }
 0x6da   : > { %2886 = vmatprep.subr.bf16.mxu0 %v3052_v3 }
 0x79b   : > { %v1293_v52 = vpop.f32.mrb[8].mxu0 }
 0x79c   : > { %v3387_v53 = vadd.f32 %v1366_v46, %v1293_v52  ;;  %v2724_v54 = vpop.f32.mrb[9].mxu0  ;;  %v2896_v52 = vpack.c.bf16 %v2536_v51, %v2535_v49 }
 0x7a3   : > { %v1449_v56 = vpop.f32.mrb[10].mxu0 }
 0x7a4   : > { %v1450_v57 = vadd.f32 %v2498_v55, %v1449_v56  ;;  %v2740_v58 = vpop.f32.mrb[11].mxu0 }
 0x7a6   : > { %v1453_v59 = vmul.f32 0.35355338, %v1450_v57 }
 0x7a8   : > { %2766 = vmatmul.mubr.msk.f32.vlgmr.msra.gmra.mrb[16].mxu1 %vm650_vm2, %v1453_v59 }
 0x7a9   : > { %2770 = vmatprep.mubr.msk.f32.mxu1 %vm3053_vm0, %v3054_v11 }
 0x7ab   : > { %v1616_v12 = vpop.f32.mrb[12].mxu0 }
 0x7ac   : > { %v2762_v16 = vpop.f32.mrb[13].mxu0  ;;  %v1617_v17 = vadd.f32 %v2512_v13, %v1616_v12 }
 0x7ae   : > { %2769 = vmatpush3.msra.mxu1 %v1617_v17 }
 0x7af   : > { %2880 = vmatprep.subr.bf16.mxu1 %v3052_v3 }
 0x87b   : > { %v1692_v2 = vpop.f32.mrb[16].mxu1 }
 0x87c   : > { %v2767_v4 = vpop.f32.mrb[17].mxu1  ;;  %v1696_v5 = vsel %vm650_vm2, %v1692_v2, -inf }
 0x87d   : > { %1697 = vmax.xlane.f32.xlu0 %v1696_v5 }
 0x90a   : > { %v1698_v6 = vpop.xlane.xlu0 %1697 }
 0x90b   : > { %v1699_v7 = vsub.f32 %v1692_v2, %v1698_v6  ;;  %v2545_v6 = vld [vmem:[%s3570_s9] ss:$0 sm:$0xff] }
 0x90d   : > { %v1700_v8 = vmul.f32 1.442695, %v1699_v7 }
 0x90f   : > { %2964 = vpow2.f32 %v1700_v8 }
 0x919   : > { %v2965_v9 = vpop.eup %2964 }
 0x91a   : > { %v1702_v10 = vsel %vm650_vm2, %v2965_v9, 0.0 }
 0x91b   : > { %1703 = vadd.xlane.f32.xlu1 %v1702_v10 }
 0x9a8   : > { %v1704_v19 = vpop.xlane.xlu1 %1703 }
 0x9a9   : > { %2966 = vrcp.f32 %v1704_v19 }
 0x9b3   : > { %v2967_v20 = vpop.eup %2966 }
 0x9b4   : > { %v1706_v21 = vmul.f32 %v2967_v20, %v2965_v9 }
 0x9b6   : > { %2771 = vmatmul.mubr.msk.f32.vlgmr.msra.gmra.mrb[18].mxu1 %vm650_vm2, %v1706_v21 }
 0x9b7   : > { %2786 = vmatprep.mubr.msk.f32.mxu1 %vm3053_vm0, %v3054_v11  ;;  %2882 = vmatpush3.bf16.msra.mxu1 %v2881_v24 }
 0x9b8   : > { %2883 = vmatprep.subr.bf16.mxu1 %v3052_v3 }
 0x9bb   : > { %2885 = vmatpush3.bf16.msra.mxu1 %v2884_v27 }
 0x9bc   : > { %2892 = vmatprep.subr.bf16.mxu1 %v3052_v3 }
 0x9be   : > { %2787 = vmatmul.mubr.msk.f32.vlgmr.msra.gmra.mrb[20].mxu1 %vm410_vm1, %v3206_v14  ;;  %v2529_v14 = vld [vmem:[%s3565_s4 + $0x78] sm:$0xff] }
 0x9bf   : > { %2808 = vmatprep.mubr.msk.f32.mxu1 %vm3053_vm0, %v3054_v11  ;;  %v2890_v34 = vpack.c.bf16 %v2529_v14, %v2528_v31  ;;  %2894 = vmatpush3.bf16.msra.mxu1 %v2893_v50 }
 0x9c0   : > { %2895 = vmatprep.subr.bf16.mxu1 %v3052_v3 }
 0x9c3   : > { %2897 = vmatpush3.bf16.msra.mxu1 %v2896_v52 }
 0x9c4   : > { %2821 = vmatprep.subr.mxu1 %v3054_v11 }
 0x9c6   : > { %2809 = vmatmul.mubr.msk.f32.vlgmr.msra.gmra.mrb[22].mxu1 %vm410_vm1, %v3208_v15 }
 0x9c7   : > { %2823 = vmatprep.mubr.msk.f32.mxu1 %vm3053_vm0, %v3054_v11  ;;  %2822 = vmatpush3.msra.mxu1 %v2543_v62 }
 0xa89   : > { %v1776_v32 = vpop.f32.mrb[18].mxu1 }
 0xa8a   : > { %v2772_v33 = vpop.f32.mrb[19].mxu1  ;;  %2776 = vmatmul.mubr.msk.f32.vlgmr.msra.gmra.mrb[14].mxu0 %vm650_vm2, %v1776_v32 }
 0xa8b   : > { %2888 = vmatpush3.bf16.msra.mxu0 %v2887_v30  ;;  %2797 = vmatprep.mubr.msk.f32.mxu0 %vm3053_vm0, %v3054_v11 }
 0xa8c   : > { %2889 = vmatprep.subr.bf16.mxu0 %v3052_v3 }
 0xa8f   : > { %2891 = vmatpush3.bf16.msra.mxu0 %v2890_v34 }
 0xa90   : > { %2811 = vmatprep.subr.mxu0 %v3054_v11 }
 0xa91   : > { %v1935_v35 = vpop.f32.mrb[20].mxu1 }
 0xa92   : > { %2798 = vmatmul.mubr.msk.f32.vlgmr.msra.gmra.mrb[16].mxu0 %vm410_vm1, %v3208_v15  ;;  %v2788_v36 = vpop.f32.mrb[21].mxu1  ;;  %v1936_v42 = vadd.f32 %v2524_v40, %v1935_v35  ;;  %v2538_v15 = vld [vmem:[%s3568_s7 + $0x3] ss:$0 sm:$0xff] }
 0xa93   : > { %2813 = vmatprep.mubr.msk.f32.mxu0 %vm3053_vm0, %v3054_v11 }
 0xa94   : > { %v1939_v46 = vmul.f32 0.35355338, %v1936_v42 }
 0xa99   : > { %v2102_v60 = vpop.f32.mrb[22].mxu1 }
 0xa9a   : > { %v2103_v61 = vadd.f32 %v2538_v15, %v2102_v60 }
 0xb5d   : > { %v1851_v37 = vpop.f32.mrb[14].mxu0 }
 0xb5e   : > { %v1855_v38 = vadd.f32 %v1851_v37, %v3387_v53  ;;  %v2777_v39 = vpop.f32.mrb[15].mxu0 }
 0xb65   : > { %v2019_v43 = vpop.f32.mrb[16].mxu0 }
 0xb66   : > { %v2020_v44 = vadd.f32 %v2531_v41, %v2019_v43  ;;  %v2799_v45 = vpop.f32.mrb[17].mxu0 }
 0xb68   : > { %2812 = vmatpush3.xpose.msk.msra.mxu0 %vm650_vm2, %v2020_v44 }
 0xb69   : > { %2816 = vmatprep.subr.mxu0 %v3054_v11 }
 0xb6b   : > { %2814 = vmatmul.mubr.msk.f32.vlgmr.msra.gmra.mrb[18].mxu0 %vm650_vm2, %v1939_v46 }
 0xb6c   : > { %2818 = vmatprep.mubr.msk.f32.mxu0 %vm3053_vm0, %v3054_v11  ;;  %v2810_v11 = vpop.f32.mrb[23].mxu1  ;;  %2817 = vmatpush3.msra.mxu0 %v2103_v61 }
 0xc3e   : > { %v2178_v53 = vpop.f32.mrb[18].mxu0 }
 0xc3f   : > { %v2815_v54 = vpop.f32.mrb[19].mxu0  ;;  %v2182_v55 = vsel %vm650_vm2, %v2178_v53, -inf }
 0xc40   : > { %2183 = vmax.xlane.f32.xlu0 %v2182_v55 }
 0xccd   : > { %v2184_v56 = vpop.xlane.xlu0 %2183 }
 0xcce   : > { %v2185_v57 = vsub.f32 %v2178_v53, %v2184_v56 }
 0xcd0   : > { %v2186_v58 = vmul.f32 1.442695, %v2185_v57 }
 0xcd2   : > { %2968 = vpow2.f32 %v2186_v58 }
 0xcdc   : > { %v2969_v59 = vpop.eup %2968 }
 0xcdd   : > { %v2188_v3 = vsel %vm650_vm2, %v2969_v59, 0.0 }
 0xcde   : > { %2189 = vadd.xlane.f32.xlu1 %v2188_v3 }
 0xd6b   : > { %v2190_v63 = vpop.xlane.xlu1 %2189 }
 0xd6c   : > { %2970 = vrcp.f32 %v2190_v63 }
 0xd76   : > { %v2971_v0 = vpop.eup %2970 }
 0xd77   : > { %v2192_v1 = vmul.f32 %v2971_v0, %v2969_v59 }
 0xd79   : > { %2819 = vmatmul.mubr.msk.f32.vlgmr.msra.gmra.mrb[20].mxu0 %vm650_vm2, %v2192_v1 }
 0xe4c   : > { %v2262_v2 = vpop.f32.mrb[20].mxu0 }
 0xe4d   : > { %v2820_v4 = vpop.f32.mrb[21].mxu0  ;;  %2824 = vmatmul.mubr.msk.f32.vlgmr.msra.gmra.mrb[24].mxu1 %vm650_vm2, %v2262_v2 }
 0xf20   : > { %v2337_v5 = vpop.f32.mrb[24].mxu1 }
 0xf21   : > { %v2341_v7 = vadd.f32 %v2337_v5, %v1855_v38  ;;  %v2825_v8 = vpop.f32.mrb[25].mxu1 }
 0xf23   : > { %v2349_v9 = vadd.f32 %v2545_v6, %v2341_v7 }
 0xf25   : > { %2350 = vst.msk [vmem:[%s385_s28] sm:$0xff] %vm410_vm1, %v2349_v9 }
 0xf26   : > { %2985 = shalt.err (!%p2982_p5)
}
 0xf27   : > { %s2986_s19 = scalar_lea.hbm %s3513_s12, 128  ;;  %s2990_s30 = scalar_lea.hbm %s3571_s10, 256 }
 0xf28   : > { %p2987_p6 = scmp.ne.s32.totalorder %s3513_s12, %s2986_s19  ;;  %p2991_p10 = scmp.lt.u32.totalorder %s3513_s12, %s3571_s10 }
 0xf29   : > { %p2992_p11 = scmp.lt.u32.totalorder %s2990_s30, %s2986_s19  ;;  %p2994_p13 = scmp.lt.u32.totalorder %s2986_s19, %s3513_s12 }
 0xf2a   : > { %p2988_p7 = pnand %p2987_p6, %p3151_p4 }
 0xf2b   : > { %p2993_p12 = por %p2992_p11, %p2991_p10 }
 0xf2c   : > { %p2989_p9 = pneg %p2988_p7 }
 0xf2d   : > { %p2995_p0 = por %p2994_p13, %p2993_p12 }
 0xf2f   : > { %p2996_p1 = pnand %p2995_p0, %p2989_p9 }
 0xf31   : > { %2999 = shalt.err (!%p2996_p1)
}
 0xf32   : > { %2898 = dma.vmem_to_hbm [thread:$0]  (%p3151_p4), %s3515_s29, 128, %s3513_s12, %s2352_s22  }
 0xf33 PF: > { %p2904_p2 = scmp.ge.s32.totalorder %s3050_s18, 2  ;;  %s2378_s0 = sand.u32 1, %s3030_s13  }
 0xf34   : > { %s2379_s24 = scalar_lea.sflag [#allocation3], %s2378_s0 }
 0xf35   : > { %p2901_p3 = pnand %p2904_p2, %p3158_p8 }
 0xf37   : > { %3025 = dma.done.wait (!%p2901_p3), %s2379_s24, 128  }
 0xf38   : > { %3027 = vsyncadd (!%p2901_p3), %s2379_s24, 4294967168  ;;  %s23_s18 = sadd.s32 1, %s3050_s18   ;;  %s3576_s13 = smov %s3034_s14 }
 0xf39   : > { %p20_p5 = scmp.ge.s32.totalorder %s23_s18, 4   ;;  %s3577_s14 = smov %s3038_s15 }
 0xf3a   : > { %s3578_s15 = smov %s3164_s26  ;;  %s3579_s16 = smov %s3046_s17 }
 0xf3b   : > { %s3580_s17 = smov %s3582_s21  ;;  %22 = sbr.rel (!%p20_p5) target bundleno = 6 (0x6), region = 119 }
 0xf42   :  { %2384 = vsyncpa [#allocation3], 1 }
 0xf43   :  { %2386 = vsyncpa [#allocation3 + $0x1], 1 }

</bundles_post_ra>
